<compile_context>
chip_gen: v7x
topology: tpu7x:2x2x1
jax: 0.10.0
libtpu: 0.0.40
codegen_flags: <defaults>
</compile_context>

<pallas_src>
import jax
import jax.numpy as jnp
from jax.experimental import pallas as pl
from jax.experimental.pallas import tpu as pltpu

# Problem sizes (CartPole-like: 4-dim observation, 2 actions, hidden 20)
STATE_SPACE = 4
HIDDEN = 20
ACTION_SPACE = 2

STATE_PAD = 8        # padded input-feature dim (MXU-friendly K for fc1)
HIDDEN_PAD = 128     # padded hidden dim (full-width lanes for fc3)

BATCH = 256          # states per call
BATCH_TILE = 256     # == BATCH  ->  grid=(1,) at the demo size

# Packed parameter slab layout: one (152, 128) f32 array, one DMA.
ROW_W1 = 0                       # rows 0..7     : W1 (S_pad, H_pad), zero pad
ROW_B1 = 8                       # row  8        : b1, zero pad
ROW_W3 = 16                      # rows 16..143  : W3 (H_pad, 128), zero pad
ROW_B3 = ROW_W3 + HIDDEN_PAD     # row  144      : b3, NEG_PAD on pad lanes
P_ROWS = 152                     # multiple of 8
P_COLS = 128
NEG_PAD = -1e30                  # pad-lane bias -> exp() == 0 in the softmax


def policy_kernel(x_ref, p_ref, o_ref):
    # x: (TB, 8) f32, p: (152, 128) packed params, o: (TB, 2) probs
    x = x_ref[...]

    # ---- fc1 + ReLU on the MXU: (TB,8) x (8,128) ----
    w1 = p_ref[ROW_W1:ROW_W1 + STATE_PAD, :]                 # (8, 128)
    b1 = p_ref[ROW_B1:ROW_B1 + 1, :]                         # (1, 128)
    h = jnp.dot(x, w1, preferred_element_type=jnp.float32) + b1
    h = jnp.maximum(h, 0.0)                                  # pad lanes stay 0

    # ---- fc3 on the MXU: (TB,128) x (128,128), full unmasked pass ----
    w3 = p_ref[ROW_W3:ROW_W3 + HIDDEN_PAD, :]                # (128, 128)
    b3 = p_ref[ROW_B3:ROW_B3 + 1, :]                         # (1, 128)
    logits = jnp.dot(h, w3, preferred_element_type=jnp.float32) + b3

    # ---- numerically stable softmax over dim=1 (exact) ----
    # Pad lanes carry bias NEG_PAD -> exp(pad - m) == 0 exactly, so the 128-lane
    # denominator equals the 2-action denominator.
    m = jnp.max(logits, axis=1, keepdims=True)
    e = jnp.exp(logits - m)
    denom = jnp.sum(e, axis=1, keepdims=True)
    o_ref[...] = e[:, :ACTION_SPACE] / denom                 # exact divide


def pack_params(w1, b1, w3, b3):
    """Pack PyTorch-layout params (W: (out, in), b: (out,)) into one slab."""
    slab = jnp.zeros((P_ROWS, P_COLS), jnp.float32)
    slab = slab.at[ROW_W1:ROW_W1 + STATE_SPACE, 0:HIDDEN].set(w1.T)   # (S, H)
    slab = slab.at[ROW_B1, 0:HIDDEN].set(b1)
    slab = slab.at[ROW_W3:ROW_W3 + HIDDEN, 0:ACTION_SPACE].set(w3.T)  # (H, A)
    slab = slab.at[ROW_B3, :].set(NEG_PAD)                   # kill pad lanes
    slab = slab.at[ROW_B3, 0:ACTION_SPACE].set(b3)
    return slab


def policy_forward(x, params, *, batch_tile=BATCH_TILE):
    """x: (B, state_space) f32, params: packed (152, 128) slab.
    Returns (B, action_space) softmax probs."""
    B = x.shape[0]
    Bp = pl.cdiv(B, batch_tile) * batch_tile
    # Feature pad 4 -> 8 (tiny, one-time); batch pad only for remainder tiles.
    x = jnp.pad(x, ((0, Bp - B), (0, STATE_PAD - STATE_SPACE)))

    out = pl.pallas_call(
        policy_kernel,
        out_shape=jax.ShapeDtypeStruct((Bp, ACTION_SPACE), jnp.float32),
        grid=(Bp // batch_tile,),
        in_specs=[
            pl.BlockSpec((batch_tile, STATE_PAD), lambda i: (i, 0)),
            pl.BlockSpec((P_ROWS, P_COLS), lambda i: (0, 0)),
        ],
        out_specs=pl.BlockSpec((batch_tile, ACTION_SPACE), lambda i: (i, 0)),
        compiler_params=pltpu.CompilerParams(
            dimension_semantics=("parallel",)),
    )(x, params)

    if Bp != B:
        out = out[:B]
    return out


def reference_forward(x, w1, b1, w3, b3):
    """Pure-JAX reference using the original PyTorch (out, in) layout."""
    h = jnp.maximum(x @ w1.T + b1, 0.0)
    logits = h @ w3.T + b3
    return jax.nn.softmax(logits, axis=1)


# TODO(synk): saved_log_probs / rewards buffers and Categorical sampling are
# training-loop state, not part of the forward pass, so they are not kernelized.

if __name__ == "__main__":
    key = jax.random.PRNGKey(0)
    k1, k2, k3, k4, kx = jax.random.split(key, 5)

    # Deterministic params in PyTorch nn.Linear layout: W (out, in), b (out,)
    w1 = jax.random.uniform(k1, (HIDDEN, STATE_SPACE), jnp.float32, -0.5, 0.5)
    b1 = jax.random.uniform(k2, (HIDDEN,), jnp.float32, -0.5, 0.5)
    w3 = jax.random.uniform(k3, (ACTION_SPACE, HIDDEN), jnp.float32, -0.5, 0.5)
    b3 = jax.random.uniform(k4, (ACTION_SPACE,), jnp.float32, -0.5, 0.5)

    x = jax.random.normal(kx, (BATCH, STATE_SPACE), jnp.float32)

    params = pack_params(w1, b1, w3, b3)
    out = jax.block_until_ready(policy_forward(x, params))

    ref = reference_forward(x, w1, b1, w3, b3)
    assert out.shape == (BATCH, ACTION_SPACE)
    # MXU f32 vs XLA-default reference matmul precision -> allow ~1e-3
    assert jnp.allclose(out, ref, atol=2e-3, rtol=2e-3), float(
        jnp.max(jnp.abs(out - ref)))
    # Exact divide -> probabilities sum to 1 to f32 rounding
    assert jnp.allclose(jnp.sum(out, axis=1), jnp.ones((BATCH,)), atol=1e-4)

    print("KERNEL_OK")
</pallas_src>

<mosaic_0001>
module attributes {stable_mosaic.version = 11 : i64} {
  func.func @policy_kernel(%arg0: i32, %arg1: memref<256x8xf32, #tpu.memory_space<vmem>>, %arg2: memref<152x128xf32, #tpu.memory_space<vmem>>, %arg3: memref<256x2xf32, #tpu.memory_space<vmem>>) attributes {dimension_semantics = [#tpu.dimension_semantics<parallel>], iteration_bounds = array<i64: 1>, scalar_prefetch = 0 : i64, scratch_operands = 0 : i64, tpu.core_type = #tpu.core_type<tc>, window_params = [{transform_indices = @transform_0, window_bounds = array<i64: 256, 8>}, {pipeline_mode = #tpu.pipeline_mode<synchronous>, transform_indices = @transform_1, window_bounds = array<i64: 152, 128>}, {transform_indices = @transform_2, window_bounds = array<i64: 256, 2>}]} {
    %c0 = arith.constant 0 : index
    %c0_0 = arith.constant 0 : index
    %0 = vector.load %arg1[%c0, %c0_0] : memref<256x8xf32, #tpu.memory_space<vmem>>, vector<256x8xf32>
    %c0_1 = arith.constant 0 : index
    %c0_2 = arith.constant 0 : index
    %1 = vector.load %arg2[%c0_1, %c0_2] : memref<152x128xf32, #tpu.memory_space<vmem>>, vector<8x128xf32>
    %c8 = arith.constant 8 : index
    %c0_3 = arith.constant 0 : index
    %2 = vector.load %arg2[%c8, %c0_3] : memref<152x128xf32, #tpu.memory_space<vmem>>, vector<1x128xf32>
    %cst = arith.constant dense<0.000000e+00> : vector<256x128xf32>
    %3 = tpu.matmul %0, %1, %cst {dimension_numbers = #tpu.dot_dimension_numbers<[1], [0], [0], [1], [0, 0, 1, 1], [], []>} : vector<256x8xf32>, vector<8x128xf32>, vector<256x128xf32> -> vector<256x128xf32>
    %4 = vector.broadcast %2 : vector<1x128xf32> to vector<256x128xf32>
    %5 = arith.addf %3, %4 : vector<256x128xf32>
    %cst_4 = arith.constant 0.000000e+00 : f32
    %6 = vector.broadcast %cst_4 : f32 to vector<256x128xf32>
    %7 = arith.maximumf %5, %6 : vector<256x128xf32>
    %c16 = arith.constant 16 : index
    %c0_5 = arith.constant 0 : index
    %8 = vector.load %arg2[%c16, %c0_5] : memref<152x128xf32, #tpu.memory_space<vmem>>, vector<128x128xf32>
    %c144 = arith.constant 144 : index
    %c0_6 = arith.constant 0 : index
    %9 = vector.load %arg2[%c144, %c0_6] : memref<152x128xf32, #tpu.memory_space<vmem>>, vector<1x128xf32>
    %cst_7 = arith.constant dense<0.000000e+00> : vector<256x128xf32>
    %10 = tpu.matmul %7, %8, %cst_7 {dimension_numbers = #tpu.dot_dimension_numbers<[1], [0], [0], [1], [0, 0, 1, 1], [], []>} : vector<256x128xf32>, vector<128x128xf32>, vector<256x128xf32> -> vector<256x128xf32>
    %11 = vector.broadcast %9 : vector<1x128xf32> to vector<256x128xf32>
    %12 = arith.addf %10, %11 : vector<256x128xf32>
    %cst_8 = arith.constant dense<0xFF800000> : vector<256xf32>
    %13 = vector.multi_reduction <maximumf>, %12, %cst_8 [1] : vector<256x128xf32> to vector<256xf32>
    %14 = vector.shape_cast %13 : vector<256xf32> to vector<256x1xf32>
    %15 = vector.broadcast %14 : vector<256x1xf32> to vector<256x128xf32>
    %16 = arith.subf %12, %15 : vector<256x128xf32>
    %17 = math.exp %16 : vector<256x128xf32>
    %cst_9 = arith.constant dense<0.000000e+00> : vector<256xf32>
    %18 = vector.multi_reduction <add>, %17, %cst_9 [1] : vector<256x128xf32> to vector<256xf32>
    %19 = vector.shape_cast %18 : vector<256xf32> to vector<256x1xf32>
    %20 = vector.extract_strided_slice %17 {offsets = [0, 0], sizes = [256, 2], strides = [1, 1]} : vector<256x128xf32> to vector<256x2xf32>
    %21 = vector.broadcast %19 : vector<256x1xf32> to vector<256x2xf32>
    %22 = arith.divf %20, %21 : vector<256x2xf32>
    %c0_10 = arith.constant 0 : index
    %c0_11 = arith.constant 0 : index
    %23 = vector.load %arg3[%c0_10, %c0_11] : memref<256x2xf32, #tpu.memory_space<vmem>>, vector<256x2xf32>
    tpu.vector_store %arg3[%c0_10, %c0_11], %22 {strides = array<i32>} : memref<256x2xf32, #tpu.memory_space<vmem>>, vector<256x2xf32>,
    return
  }
  func.func @transform_0(%arg0: i32) -> (i32, i32) {
    %c0_i32 = arith.constant 0 : i32
    %c0_i32_0 = arith.constant 0 : i32
    return %arg0, %c0_i32 : i32, i32
  }
  func.func @transform_1(%arg0: i32) -> (i32, i32) {
    %c0_i32 = arith.constant 0 : i32
    %c0_i32_0 = arith.constant 0 : i32
    %c0_i32_1 = arith.constant 0 : i32
    return %c0_i32, %c0_i32_0 : i32, i32
  }
  func.func @transform_2(%arg0: i32) -> (i32, i32) {
    %c0_i32 = arith.constant 0 : i32
    %c0_i32_0 = arith.constant 0 : i32
    return %arg0, %c0_i32 : i32, i32
  }
}

</mosaic_0001>

<bundles_post_ra>
// kernel: tpu_custom_call.1
= control target key start
LH: loop header
LB: loop body
LE: loop exit
PB: predicated region body
PF: predicated region fallthrough
CT: control target
= control target key end

     0   :  { %vm49_vm0 = vcmask 64512   ;;  %vm937_vm1 = vcmask 15360   ;;  %s2047_s1 = inlined_call_operand.vmem [shape: f32[152,128], index: 1, kind: input, shape index: {}]   ;;  %s2048_s0 = inlined_call_operand.vmem [shape: f32[256,8], index: 0, kind: input, shape index: {}]   ;;  %s2049_s2 = inlined_call_operand.vmem [shape: f32[256,2], index: 2, kind: output, shape index: {}]  }
   0x1   :  { %v43_v0 = vld [vmem:[%s2047_s1] sm:$0xff]  ;;  %v12_v2 = vld [vmem:[%s2048_s0 + $0x8] sm:$0xff]  ;;  %v13_v3 = vld [vmem:[%s2048_s0 + $0x10] sm:$0xff] }
   0x2   :  { %1089 = vmatprep.subr.mxu0 %v43_v0  ;;  %v11_v1 = vld [vmem:[%s2048_s0] sm:$0xff]  ;;  %v14_v4 = vld [vmem:[%s2048_s0 + $0x18] sm:$0xff]  ;;  %v16_v6 = vld [vmem:[%s2048_s0 + $0x28] sm:$0xff] }
   0x3   :  { %1090 = vmatpush3.msra.mxu0 %v43_v0  ;;  %1091 = vmatprep.mubr.msk.f32.mxu0 %vm49_vm0, %v11_v1  ;;  %v15_v5 = vld [vmem:[%s2048_s0 + $0x20] sm:$0xff]  ;;  %v17_v7 = vld [vmem:[%s2048_s0 + $0x30] sm:$0xff]  ;;  %v18_v8 = vld [vmem:[%s2048_s0 + $0x38] sm:$0xff] }
   0x4   :  { %1092 = vmatmul.mubr.msk.f32.vlgmr.msra.gmra.mrb[0].mxu0 %vm49_vm0, %v12_v2  ;;  %v403_v9 = vld [vmem:[%s2047_s1 + $0x10] sm:$0xff]  ;;  %v404_v10 = vld [vmem:[%s2047_s1 + $0x18] sm:$0xff]  ;;  %v405_v11 = vld [vmem:[%s2047_s1 + $0x20] sm:$0xff] }
   0x5   :  { %1094 = vmatprep.mubr.msk.f32.mxu0 %vm49_vm0, %v13_v3  ;;  %v406_v12 = vld [vmem:[%s2047_s1 + $0x28] sm:$0xff]  ;;  %v19_v13 = vld [vmem:[%s2048_s0 + $0x40] sm:$0xff]  ;;  %v1219_v14 = vpack.c.bf16 %v404_v10, %v403_v9  ;;  %v407_v16 = vld [vmem:[%s2047_s1 + $0x30] sm:$0xff] }
   0x6   :  { %v1223_v15 = vpack.c.bf16 %v406_v12, %v405_v11  ;;  %v408_v17 = vld [vmem:[%s2047_s1 + $0x38] sm:$0xff]  ;;  %v20_v18 = vld [vmem:[%s2048_s0 + $0x48] sm:$0xff]  ;;  %v21_v19 = vld [vmem:[%s2048_s0 + $0x50] sm:$0xff] }
   0x7   :  { %1220 = vmatprep.subr.bf16.mxu0 %v1219_v14  ;;  %v1227_v20 = vpack.c.bf16 %v408_v17, %v407_v16  ;;  %1251 = vmatprep.subr.bf16.mxu1 %v1219_v14  ;;  %v409_v21 = vld [vmem:[%s2047_s1 + $0x40] sm:$0xff]  ;;  %v410_v22 = vld [vmem:[%s2047_s1 + $0x48] sm:$0xff]  ;;  %v22_v23 = vld [vmem:[%s2048_s0 + $0x58] sm:$0xff] }
   0x8   :  { %1095 = vmatmul.mubr.msk.f32.gmra.mrb[2].mxu0 %vm49_vm0, %v14_v4  ;;  %1259 = vmatpush3.bf16.msra.mxu1 %v1219_v14  ;;  %v23_v24 = vld [vmem:[%s2048_s0 + $0x60] sm:$0xff]  ;;  %v1231_v25 = vpack.c.bf16 %v410_v22, %v409_v21  ;;  %v411_v26 = vld [vmem:[%s2047_s1 + $0x50] sm:$0xff]  ;;  %v412_v27 = vld [vmem:[%s2047_s1 + $0x58] sm:$0xff] }
   0x9   :  { %1097 = vmatprep.mubr.msk.f32.mxu0 %vm49_vm0, %v15_v5  ;;  %1222 = vmatpush3.bf16.msra.mxu0 %v1219_v14  ;;  %v24_v28 = vld [vmem:[%s2048_s0 + $0x68] sm:$0xff]  ;;  %v25_v29 = vld [vmem:[%s2048_s0 + $0x70] sm:$0xff]  ;;  %v1235_v30 = vpack.c.bf16 %v412_v27, %v411_v26  ;;  %v413_v31 = vld [vmem:[%s2047_s1 + $0x60] sm:$0xff] }
   0xa   :  { %1224 = vmatprep.subr.bf16.mxu0 %v1223_v15  ;;  %1252 = vmatprep.subr.bf16.mxu1 %v1223_v15  ;;  %v414_v32 = vld [vmem:[%s2047_s1 + $0x68] sm:$0xff]  ;;  %v26_v33 = vld [vmem:[%s2048_s0 + $0x78] sm:$0xff]  ;;  %v27_v34 = vld [vmem:[%s2048_s0 + $0x80] sm:$0xff] }
   0xb   :  { %v1239_v35 = vpack.c.bf16 %v414_v32, %v413_v31  ;;  %v415_v36 = vld [vmem:[%s2047_s1 + $0x70] sm:$0xff]  ;;  %v416_v37 = vld [vmem:[%s2047_s1 + $0x78] sm:$0xff]  ;;  %v28_v38 = vld [vmem:[%s2048_s0 + $0x88] sm:$0xff] }
   0xc   :  { %1098 = vmatmul.mubr.msk.f32.gmra.mrb[4].mxu0 %vm49_vm0, %v16_v6  ;;  %1260 = vmatpush3.bf16.msra.mxu1 %v1223_v15  ;;  %v29_v39 = vld [vmem:[%s2048_s0 + $0x90] sm:$0xff]  ;;  %v1243_v40 = vpack.c.bf16 %v416_v37, %v415_v36  ;;  %v417_v41 = vld [vmem:[%s2047_s1 + $0x80] sm:$0xff]  ;;  %v418_v42 = vld [vmem:[%s2047_s1 + $0x88] sm:$0xff] }
   0xd   :  { %1100 = vmatprep.mubr.msk.f32.mxu0 %vm49_vm0, %v17_v7  ;;  %1226 = vmatpush3.bf16.msra.mxu0 %v1223_v15  ;;  %v30_v43 = vld [vmem:[%s2048_s0 + $0x98] sm:$0xff]  ;;  %v31_v44 = vld [vmem:[%s2048_s0 + $0xa0] sm:$0xff]  ;;  %v1247_v45 = vpack.c.bf16 %v418_v42, %v417_v41  ;;  %v32_v46 = vld [vmem:[%s2048_s0 + $0xa8] sm:$0xff] }
   0xe   :  { %1228 = vmatprep.subr.bf16.mxu0 %v1227_v20  ;;  %1253 = vmatprep.subr.bf16.mxu1 %v1227_v20  ;;  %v33_v47 = vld [vmem:[%s2048_s0 + $0xb0] sm:$0xff]  ;;  %v34_v48 = vld [vmem:[%s2048_s0 + $0xb8] sm:$0xff]  ;;  %v35_v49 = vld [vmem:[%s2048_s0 + $0xc0] sm:$0xff] }
   0xf   :  { %v36_v50 = vld [vmem:[%s2048_s0 + $0xc8] sm:$0xff]  ;;  %v37_v51 = vld [vmem:[%s2048_s0 + $0xd0] sm:$0xff]  ;;  %v38_v52 = vld [vmem:[%s2048_s0 + $0xd8] sm:$0xff] }
  0x10   :  { %1101 = vmatmul.mubr.msk.f32.gmra.mrb[6].mxu0 %vm49_vm0, %v18_v8  ;;  %1261 = vmatpush3.bf16.msra.mxu1 %v1227_v20  ;;  %v39_v53 = vld [vmem:[%s2048_s0 + $0xe0] sm:$0xff]  ;;  %v40_v54 = vld [vmem:[%s2048_s0 + $0xe8] sm:$0xff]  ;;  %v41_v55 = vld [vmem:[%s2048_s0 + $0xf0] sm:$0xff] }
  0x11   :  { %1103 = vmatprep.mubr.msk.f32.mxu0 %vm49_vm0, %v19_v13  ;;  %1230 = vmatpush3.bf16.msra.mxu0 %v1227_v20  ;;  %v42_v56 = vld [vmem:[%s2048_s0 + $0xf8] sm:$0xff]  ;;  %v1592_v57 = vld [vmem:[%s2047_s1 + $0x8] ss:$0 sm:$0xff] }
  0x12   :  { %1232 = vmatprep.subr.bf16.mxu0 %v1231_v25  ;;  %1254 = vmatprep.subr.bf16.mxu1 %v1231_v25 }
  0x14   :  { %1104 = vmatmul.mubr.msk.f32.gmra.mrb[8].mxu0 %vm49_vm0, %v20_v18  ;;  %1262 = vmatpush3.bf16.msra.mxu1 %v1231_v25 }
  0x15   :  { %1106 = vmatprep.mubr.msk.f32.mxu0 %vm49_vm0, %v21_v19  ;;  %1234 = vmatpush3.bf16.msra.mxu0 %v1231_v25 }
  0x16   :  { %1236 = vmatprep.subr.bf16.mxu0 %v1235_v30  ;;  %1255 = vmatprep.subr.bf16.mxu1 %v1235_v30 }
  0x18   :  { %1107 = vmatmul.mubr.msk.f32.gmra.mrb[10].mxu0 %vm49_vm0, %v22_v23  ;;  %1263 = vmatpush3.bf16.msra.mxu1 %v1235_v30 }
  0x19   :  { %1109 = vmatprep.mubr.msk.f32.mxu0 %vm49_vm0, %v23_v24  ;;  %1238 = vmatpush3.bf16.msra.mxu0 %v1235_v30 }
  0x1a   :  { %1240 = vmatprep.subr.bf16.mxu0 %v1239_v35  ;;  %1256 = vmatprep.subr.bf16.mxu1 %v1239_v35 }
  0x1c   :  { %1110 = vmatmul.mubr.msk.f32.gmra.mrb[12].mxu0 %vm49_vm0, %v24_v28  ;;  %1264 = vmatpush3.bf16.msra.mxu1 %v1239_v35 }
  0x1d   :  { %1112 = vmatprep.mubr.msk.f32.mxu0 %vm49_vm0, %v25_v29  ;;  %1242 = vmatpush3.bf16.msra.mxu0 %v1239_v35 }
  0x1e   :  { %1244 = vmatprep.subr.bf16.mxu0 %v1243_v40  ;;  %1257 = vmatprep.subr.bf16.mxu1 %v1243_v40 }
  0x20   :  { %1113 = vmatmul.mubr.msk.f32.gmra.mrb[14].mxu0 %vm49_vm0, %v26_v33  ;;  %1265 = vmatpush3.bf16.msra.mxu1 %v1243_v40 }
  0x21   :  { %1115 = vmatprep.mubr.msk.f32.mxu0 %vm49_vm0, %v27_v34  ;;  %1246 = vmatpush3.bf16.msra.mxu0 %v1243_v40 }
  0x22   :  { %1248 = vmatprep.subr.bf16.mxu0 %v1247_v45  ;;  %1258 = vmatprep.subr.bf16.mxu1 %v1247_v45 }
  0x24   :  { %1116 = vmatmul.mubr.msk.f32.gmra.mrb[16].mxu0 %vm49_vm0, %v28_v38  ;;  %1266 = vmatpush3.bf16.msra.mxu1 %v1247_v45 }
  0x25   :  { %1118 = vmatprep.mubr.msk.f32.mxu0 %vm49_vm0, %v29_v39  ;;  %1250 = vmatpush3.bf16.msra.mxu0 %v1247_v45 }
  0x28   :  { %1119 = vmatmul.mubr.msk.f32.gmra.mrb[18].mxu0 %vm49_vm0, %v30_v43 }
  0x29   :  { %1121 = vmatprep.mubr.msk.f32.mxu0 %vm49_vm0, %v31_v44 }
  0x2c   :  { %1122 = vmatmul.mubr.msk.f32.gmra.mrb[20].mxu0 %vm49_vm0, %v32_v46 }
  0x2d   :  { %1124 = vmatprep.mubr.msk.f32.mxu0 %vm49_vm0, %v33_v47 }
  0x30   :  { %1125 = vmatmul.mubr.msk.f32.gmra.mrb[22].mxu0 %vm49_vm0, %v34_v48 }
  0x31   :  { %1127 = vmatprep.mubr.msk.f32.mxu0 %vm49_vm0, %v35_v49 }
  0x34   :  { %1128 = vmatmul.mubr.msk.f32.gmra.mrb[24].mxu0 %vm49_vm0, %v36_v50 }
  0x35   :  { %1130 = vmatprep.mubr.msk.f32.mxu0 %vm49_vm0, %v37_v51 }
  0x38   :  { %1131 = vmatmul.mubr.msk.f32.gmra.mrb[26].mxu0 %vm49_vm0, %v38_v52 }
  0x39   :  { %1133 = vmatprep.mubr.msk.f32.mxu0 %vm49_vm0, %v39_v53 }
  0x3c   :  { %1134 = vmatmul.mubr.msk.f32.gmra.mrb[28].mxu0 %vm49_vm0, %v40_v54 }
  0x3d   :  { %1136 = vmatprep.mubr.msk.f32.mxu0 %vm49_vm0, %v41_v55 }
  0x40   :  { %1137 = vmatmul.mubr.msk.f32.gmra.mrb[30].mxu0 %vm49_vm0, %v42_v56 }
  0xd7   :  { %v1093_v58 = vpop.f32.mrb[0].mxu0 }
  0xd8   :  { %v218_v59 = vadd.f32 %v1093_v58, %v1592_v57  ;;  %v212_v60 = vpop.f32.mrb[1].mxu0 }
  0xd9   :  { %v213_v61 = vadd.f32 %v1592_v57, %v212_v60 }
  0xda   :  { %v372_v0 = vmax.f32 %v218_v59, 0.0 }
  0xdb   :  { %v371_v62 = vmax.f32 %v213_v61, 0.0  ;;  %v1096_v63 = vpop.f32.mrb[2].mxu0 }
  0xdc   :  { %v228_v1 = vadd.f32 %v1096_v63, %v1592_v57  ;;  %v222_v2 = vpop.f32.mrb[3].mxu0 }
  0xdd   :  { %v223_v3 = vadd.f32 %v1592_v57, %v222_v2  ;;  %1171 = vmatprep.mubr.f32.mxu0 %v371_v62 }
  0xde   :  { %1172 = vmatmul.mubr.f32.vlgmr.msra.gmra.mrb[32].mxu0 %v372_v0  ;;  %v374_v6 = vmax.f32 %v228_v1, 0.0 }
  0xdf   :  { %v373_v4 = vmax.f32 %v223_v3, 0.0  ;;  %v1099_v5 = vpop.f32.mrb[4].mxu0 }
  0xe0   :  { %v238_v7 = vadd.f32 %v1099_v5, %v1592_v57  ;;  %v232_v8 = vpop.f32.mrb[5].mxu0 }
  0xe1   :  { %v233_v9 = vadd.f32 %v1592_v57, %v232_v8  ;;  %1174 = vmatprep.mubr.f32.mxu0 %v373_v4 }
  0xe2   :  { %v376_v10 = vmax.f32 %v238_v7, 0.0  ;;  %1175 = vmatmul.mubr.f32.gmra.mrb[34].mxu0 %v374_v6 }
  0xe3   :  { %v375_v11 = vmax.f32 %v233_v9, 0.0  ;;  %v1102_v12 = vpop.f32.mrb[6].mxu0 }
  0xe4   :  { %v248_v13 = vadd.f32 %v1102_v12, %v1592_v57  ;;  %v242_v14 = vpop.f32.mrb[7].mxu0 }
  0xe5   :  { %1177 = vmatprep.mubr.f32.mxu0 %v375_v11  ;;  %v243_v15 = vadd.f32 %v1592_v57, %v242_v14 }
  0xe6   :  { %v378_v16 = vmax.f32 %v248_v13, 0.0  ;;  %1178 = vmatmul.mubr.f32.gmra.mrb[36].mxu0 %v376_v10 }
  0xe7   :  { %v1105_v17 = vpop.f32.mrb[8].mxu0  ;;  %v377_v18 = vmax.f32 %v243_v15, 0.0 }
  0xe8   :  { %v258_v19 = vadd.f32 %v1105_v17, %v1592_v57  ;;  %v252_v20 = vpop.f32.mrb[9].mxu0 }
  0xe9   :  { %v253_v21 = vadd.f32 %v1592_v57, %v252_v20  ;;  %1180 = vmatprep.mubr.f32.mxu1 %v377_v18 }
  0xea   :  { %v380_v22 = vmax.f32 %v258_v19, 0.0  ;;  %1181 = vmatmul.mubr.f32.vlgmr.msra.gmra.mrb[0].mxu1 %v378_v16 }
  0xeb   :  { %v379_v23 = vmax.f32 %v253_v21, 0.0  ;;  %v1108_v24 = vpop.f32.mrb[10].mxu0 }
  0xec   :  { %v268_v25 = vadd.f32 %v1108_v24, %v1592_v57  ;;  %v262_v26 = vpop.f32.mrb[11].mxu0 }
  0xed   :  { %v263_v27 = vadd.f32 %v1592_v57, %v262_v26  ;;  %1183 = vmatprep.mubr.f32.mxu1 %v379_v23 }
  0xee   :  { %v382_v28 = vmax.f32 %v268_v25, 0.0  ;;  %1184 = vmatmul.mubr.f32.gmra.mrb[2].mxu1 %v380_v22 }
  0xef   :  { %v381_v29 = vmax.f32 %v263_v27, 0.0  ;;  %v1111_v30 = vpop.f32.mrb[12].mxu0  ;;  %v1629_v27 = vld [vmem:[%s2047_s1 + $0x90] ss:$0 sm:$0xff] }
  0xf0   :  { %v278_v31 = vadd.f32 %v1111_v30, %v1592_v57  ;;  %v272_v32 = vpop.f32.mrb[13].mxu0 }
  0xf1   :  { %v273_v33 = vadd.f32 %v1592_v57, %v272_v32  ;;  %1186 = vmatprep.mubr.f32.mxu1 %v381_v29 }
  0xf2   :  { %v384_v34 = vmax.f32 %v278_v31, 0.0  ;;  %1187 = vmatmul.mubr.f32.gmra.mrb[4].mxu1 %v382_v28 }
  0xf3   :  { %v383_v35 = vmax.f32 %v273_v33, 0.0  ;;  %v1114_v36 = vpop.f32.mrb[14].mxu0 }
  0xf4   :  { %v288_v37 = vadd.f32 %v1114_v36, %v1592_v57  ;;  %v282_v38 = vpop.f32.mrb[15].mxu0 }
  0xf5   :  { %v283_v39 = vadd.f32 %v1592_v57, %v282_v38  ;;  %1189 = vmatprep.mubr.f32.mxu1 %v383_v35 }
  0xf6   :  { %v386_v40 = vmax.f32 %v288_v37, 0.0  ;;  %1190 = vmatmul.mubr.f32.gmra.mrb[6].mxu1 %v384_v34 }
  0xf7   :  { %v385_v41 = vmax.f32 %v283_v39, 0.0  ;;  %v1117_v42 = vpop.f32.mrb[16].mxu0 }
  0xf8   :  { %v298_v43 = vadd.f32 %v1117_v42, %v1592_v57  ;;  %v292_v44 = vpop.f32.mrb[17].mxu0 }
  0xf9   :  { %v293_v45 = vadd.f32 %v1592_v57, %v292_v44  ;;  %1192 = vmatprep.mubr.f32.mxu1 %v385_v41 }
  0xfa   :  { %v388_v46 = vmax.f32 %v298_v43, 0.0  ;;  %1193 = vmatmul.mubr.f32.gmra.mrb[8].mxu1 %v386_v40 }
  0xfb   :  { %v387_v47 = vmax.f32 %v293_v45, 0.0  ;;  %v1120_v48 = vpop.f32.mrb[18].mxu0 }
  0xfc   :  { %v308_v49 = vadd.f32 %v1120_v48, %v1592_v57  ;;  %v302_v50 = vpop.f32.mrb[19].mxu0 }
  0xfd   :  { %v303_v51 = vadd.f32 %v1592_v57, %v302_v50  ;;  %1195 = vmatprep.mubr.f32.mxu1 %v387_v47 }
  0xfe   :  { %v390_v52 = vmax.f32 %v308_v49, 0.0  ;;  %1196 = vmatmul.mubr.f32.gmra.mrb[10].mxu1 %v388_v46 }
  0xff   :  { %v389_v53 = vmax.f32 %v303_v51, 0.0  ;;  %v1123_v54 = vpop.f32.mrb[20].mxu0 }
 0x100   :  { %v318_v55 = vadd.f32 %v1123_v54, %v1592_v57  ;;  %v312_v56 = vpop.f32.mrb[21].mxu0 }
 0x101   :  { %v313_v58 = vadd.f32 %v1592_v57, %v312_v56  ;;  %1198 = vmatprep.mubr.f32.mxu1 %v389_v53 }
 0x102   :  { %v392_v59 = vmax.f32 %v318_v55, 0.0  ;;  %1199 = vmatmul.mubr.f32.gmra.mrb[12].mxu1 %v390_v52 }
 0x103   :  { %v391_v60 = vmax.f32 %v313_v58, 0.0  ;;  %v1126_v61 = vpop.f32.mrb[22].mxu0 }
 0x104   :  { %v328_v62 = vadd.f32 %v1126_v61, %v1592_v57  ;;  %v322_v63 = vpop.f32.mrb[23].mxu0 }
 0x105   :  { %v323_v0 = vadd.f32 %v1592_v57, %v322_v63  ;;  %1201 = vmatprep.mubr.f32.mxu1 %v391_v60 }
 0x106   :  { %v394_v1 = vmax.f32 %v328_v62, 0.0  ;;  %1202 = vmatmul.mubr.f32.gmra.mrb[14].mxu1 %v392_v59 }
 0x107   :  { %v393_v2 = vmax.f32 %v323_v0, 0.0  ;;  %v1129_v3 = vpop.f32.mrb[24].mxu0 }
 0x108   :  { %v338_v4 = vadd.f32 %v1129_v3, %v1592_v57  ;;  %v332_v5 = vpop.f32.mrb[25].mxu0 }
 0x109   :  { %v333_v6 = vadd.f32 %v1592_v57, %v332_v5  ;;  %1204 = vmatprep.mubr.f32.mxu1 %v393_v2 }
 0x10a   :  { %v396_v7 = vmax.f32 %v338_v4, 0.0  ;;  %1205 = vmatmul.mubr.f32.gmra.mrb[16].mxu1 %v394_v1 }
 0x10b   :  { %v395_v8 = vmax.f32 %v333_v6, 0.0  ;;  %v1132_v9 = vpop.f32.mrb[26].mxu0 }
 0x10c   :  { %v348_v10 = vadd.f32 %v1132_v9, %v1592_v57  ;;  %v342_v11 = vpop.f32.mrb[27].mxu0 }
 0x10d   :  { %v343_v12 = vadd.f32 %v1592_v57, %v342_v11  ;;  %1207 = vmatprep.mubr.f32.mxu1 %v395_v8 }
 0x10e   :  { %v398_v13 = vmax.f32 %v348_v10, 0.0  ;;  %1208 = vmatmul.mubr.f32.gmra.mrb[18].mxu1 %v396_v7 }
 0x10f   :  { %v397_v14 = vmax.f32 %v343_v12, 0.0  ;;  %v1135_v15 = vpop.f32.mrb[28].mxu0 }
 0x110   :  { %v358_v16 = vadd.f32 %v1135_v15, %v1592_v57  ;;  %v352_v17 = vpop.f32.mrb[29].mxu0 }
 0x111   :  { %v353_v18 = vadd.f32 %v1592_v57, %v352_v17  ;;  %1210 = vmatprep.mubr.f32.mxu1 %v397_v14 }
 0x112   :  { %v400_v19 = vmax.f32 %v358_v16, 0.0  ;;  %1211 = vmatmul.mubr.f32.gmra.mrb[20].mxu1 %v398_v13 }
 0x113   :  { %v399_v20 = vmax.f32 %v353_v18, 0.0  ;;  %v1138_v21 = vpop.f32.mrb[30].mxu0 }
 0x114   :  { %v368_v22 = vadd.f32 %v1138_v21, %v1592_v57  ;;  %v362_v23 = vpop.f32.mrb[31].mxu0 }
 0x115   :  { %v363_v24 = vadd.f32 %v1592_v57, %v362_v23  ;;  %1213 = vmatprep.mubr.f32.mxu1 %v399_v20 }
 0x116   :  { %v402_v25 = vmax.f32 %v368_v22, 0.0  ;;  %1214 = vmatmul.mubr.f32.gmra.mrb[22].mxu1 %v400_v19 }
 0x117   :  { %v401_v26 = vmax.f32 %v363_v24, 0.0 }
 0x119   :  { %1216 = vmatprep.mubr.f32.mxu1 %v401_v26 }
 0x11a   :  { %1217 = vmatmul.mubr.f32.gmra.mrb[24].mxu1 %v402_v25 }
 0x1b1   :  { %v1173_v28 = vpop.f32.mrb[32].mxu0 }
 0x1b2   :  { %v1632_v29 = vadd.f32 %v1173_v28, %v1629_v27  ;;  %v490_v30 = vpop.f32.mrb[33].mxu0 }
 0x1b3   :  { %v1635_v31 = vadd.f32 %v1629_v27, %v490_v30 }
 0x1b4   :  { %651 = vmax.xlane.f32.xlu0 %v1632_v29 }
 0x1b5   :  { %v1176_v57 = vpop.f32.mrb[34].mxu0 }
 0x1b6   :  { %v1639_v32 = vadd.f32 %v1176_v57, %v1629_v27  ;;  %v500_v33 = vpop.f32.mrb[35].mxu0 }
 0x1b7   :  { %v1642_v34 = vadd.f32 %v1629_v27, %v500_v33 }
 0x1b8   :  { %655 = vmax.xlane.f32.xlu1 %v1639_v32  ;;  %649 = vmax.xlane.f32.xlu0 %v1635_v31 }
 0x1b9   :  { %v1179_v35 = vpop.f32.mrb[36].mxu0 }
 0x1ba   :  { %v1647_v36 = vadd.f32 %v1179_v35, %v1629_v27  ;;  %v510_v37 = vpop.f32.mrb[37].mxu0 }
 0x1bb   :  { %v1650_v38 = vadd.f32 %v1629_v27, %v510_v37 }
 0x1bc   :  { %653 = vmax.xlane.f32.xlu1 %v1642_v34 }
 0x1bd   :  { %v1182_v39 = vpop.f32.mrb[0].mxu1  ;;  %657 = vmax.xlane.f32.xlu0 %v1650_v38 }
 0x1be   :  { %v1655_v40 = vadd.f32 %v1182_v39, %v1629_v27  ;;  %v520_v41 = vpop.f32.mrb[1].mxu1 }
 0x1bf   :  { %v1658_v42 = vadd.f32 %v1629_v27, %v520_v41 }
 0x1c0   :  { %659 = vmax.xlane.f32.xlu1 %v1647_v36 }
 0x1c1   :  { %v1185_v43 = vpop.f32.mrb[2].mxu1  ;;  %661 = vmax.xlane.f32.xlu0 %v1658_v42 }
 0x1c2   :  { %v1663_v44 = vadd.f32 %v1185_v43, %v1629_v27  ;;  %v530_v45 = vpop.f32.mrb[3].mxu1 }
 0x1c3   :  { %v1666_v46 = vadd.f32 %v1629_v27, %v530_v45 }
 0x1c4   :  { %663 = vmax.xlane.f32.xlu1 %v1655_v40 }
 0x1c5   :  { %v1188_v47 = vpop.f32.mrb[4].mxu1  ;;  %665 = vmax.xlane.f32.xlu0 %v1666_v46 }
 0x1c6   :  { %v1671_v48 = vadd.f32 %v1188_v47, %v1629_v27  ;;  %v540_v49 = vpop.f32.mrb[5].mxu1 }
 0x1c7   :  { %v1674_v50 = vadd.f32 %v1629_v27, %v540_v49 }
 0x1c8   :  { %667 = vmax.xlane.f32.xlu1 %v1663_v44 }
 0x1c9   :  { %v1191_v51 = vpop.f32.mrb[6].mxu1  ;;  %669 = vmax.xlane.f32.xlu0 %v1674_v50 }
 0x1ca   :  { %v1679_v52 = vadd.f32 %v1191_v51, %v1629_v27  ;;  %v550_v53 = vpop.f32.mrb[7].mxu1 }
 0x1cb   :  { %v1682_v54 = vadd.f32 %v1629_v27, %v550_v53 }
 0x1cc   :  { %671 = vmax.xlane.f32.xlu1 %v1671_v48 }
 0x1cd   :  { %v1194_v55 = vpop.f32.mrb[8].mxu1  ;;  %673 = vmax.xlane.f32.xlu0 %v1682_v54 }
 0x1ce   :  { %v1687_v56 = vadd.f32 %v1194_v55, %v1629_v27  ;;  %v560_v58 = vpop.f32.mrb[9].mxu1 }
 0x1cf   :  { %v1690_v59 = vadd.f32 %v1629_v27, %v560_v58 }
 0x1d0   :  { %675 = vmax.xlane.f32.xlu1 %v1679_v52 }
 0x1d1   :  { %v1197_v60 = vpop.f32.mrb[10].mxu1  ;;  %677 = vmax.xlane.f32.xlu0 %v1690_v59 }
 0x1d2   :  { %v1695_v61 = vadd.f32 %v1197_v60, %v1629_v27  ;;  %v570_v62 = vpop.f32.mrb[11].mxu1 }
 0x1d3   :  { %v1698_v63 = vadd.f32 %v1629_v27, %v570_v62 }
 0x1d4   :  { %679 = vmax.xlane.f32.xlu1 %v1687_v56 }
 0x1d5   :  { %v1200_v0 = vpop.f32.mrb[12].mxu1  ;;  %681 = vmax.xlane.f32.xlu0 %v1698_v63 }
 0x1d6   :  { %v1703_v1 = vadd.f32 %v1200_v0, %v1629_v27  ;;  %v580_v2 = vpop.f32.mrb[13].mxu1 }
 0x1d7   :  { %v1706_v3 = vadd.f32 %v1629_v27, %v580_v2 }
 0x1d8   :  { %683 = vmax.xlane.f32.xlu1 %v1695_v61 }
 0x1d9   :  { %v1203_v4 = vpop.f32.mrb[14].mxu1  ;;  %685 = vmax.xlane.f32.xlu0 %v1706_v3 }
 0x1da   :  { %v1711_v5 = vadd.f32 %v1203_v4, %v1629_v27  ;;  %v590_v6 = vpop.f32.mrb[15].mxu1 }
 0x1db   :  { %v1714_v7 = vadd.f32 %v1629_v27, %v590_v6 }
 0x1dc   :  { %687 = vmax.xlane.f32.xlu1 %v1703_v1 }
 0x1dd   :  { %v1206_v8 = vpop.f32.mrb[16].mxu1  ;;  %689 = vmax.xlane.f32.xlu0 %v1714_v7 }
 0x1de   :  { %v1719_v9 = vadd.f32 %v1206_v8, %v1629_v27  ;;  %v600_v10 = vpop.f32.mrb[17].mxu1 }
 0x1df   :  { %v1722_v11 = vadd.f32 %v1629_v27, %v600_v10 }
 0x1e0   :  { %691 = vmax.xlane.f32.xlu1 %v1711_v5 }
 0x1e1   :  { %v1209_v12 = vpop.f32.mrb[18].mxu1  ;;  %693 = vmax.xlane.f32.xlu0 %v1722_v11 }
 0x1e2   :  { %v1727_v13 = vadd.f32 %v1209_v12, %v1629_v27  ;;  %v610_v14 = vpop.f32.mrb[19].mxu1 }
 0x1e3   :  { %v1730_v15 = vadd.f32 %v1629_v27, %v610_v14 }
 0x1e4   :  { %695 = vmax.xlane.f32.xlu1 %v1719_v9 }
 0x1e5   :  { %v1212_v16 = vpop.f32.mrb[20].mxu1  ;;  %697 = vmax.xlane.f32.xlu0 %v1730_v15 }
 0x1e6   :  { %v1735_v17 = vadd.f32 %v1212_v16, %v1629_v27  ;;  %v620_v18 = vpop.f32.mrb[21].mxu1 }
 0x1e7   :  { %v1738_v19 = vadd.f32 %v1629_v27, %v620_v18 }
 0x1e8   :  { %699 = vmax.xlane.f32.xlu1 %v1727_v13 }
 0x1e9   :  { %v1215_v20 = vpop.f32.mrb[22].mxu1  ;;  %701 = vmax.xlane.f32.xlu0 %v1738_v19 }
 0x1ea   :  { %v1743_v21 = vadd.f32 %v1215_v20, %v1629_v27  ;;  %v630_v22 = vpop.f32.mrb[23].mxu1 }
 0x1eb   :  { %v1746_v23 = vadd.f32 %v1629_v27, %v630_v22 }
 0x1ec   :  { %703 = vmax.xlane.f32.xlu1 %v1735_v17 }
 0x1ed   :  { %v1218_v24 = vpop.f32.mrb[24].mxu1  ;;  %705 = vmax.xlane.f32.xlu0 %v1746_v23 }
 0x1ee   :  { %v1751_v25 = vadd.f32 %v1218_v24, %v1629_v27  ;;  %v640_v26 = vpop.f32.mrb[25].mxu1 }
 0x1ef   :  { %v1754_v28 = vadd.f32 %v1629_v27, %v640_v26 }
 0x1f0   :  { %707 = vmax.xlane.f32.xlu1 %v1743_v21 }
 0x1f1   :  { %709 = vmax.xlane.f32.xlu0 %v1754_v28 }
 0x1f4   :  { %711 = vmax.xlane.f32.xlu1 %v1751_v25 }
 0x241   :  { %v652_v30 = vpop.xlane.xlu0 %651 }
 0x242   :  { %v714_v57 = vsub.f32 %v1632_v29, %v652_v30 }
 0x244   :  { %v747_v33 = vmul.f32 1.442695, %v714_v57 }
 0x245   :  { %v656_v35 = vpop.xlane.xlu1 %655  ;;  %v650_v37 = vpop.xlane.xlu0 %649 }
 0x246   :  { %1267 = vpow2.f32 %v747_v33  ;;  %v716_v39 = vsub.f32 %v1639_v32, %v656_v35  ;;  %v713_v41 = vsub.f32 %v1635_v31, %v650_v37 }
 0x248   :  { %v751_v43 = vmul.f32 1.442695, %v716_v39  ;;  %v745_v27 = vmul.f32 1.442695, %v713_v41 }
 0x249   :  { %v654_v45 = vpop.xlane.xlu1 %653 }
 0x24a   :  { %1269 = vpow2.f32 %v751_v43  ;;  %v715_v47 = vsub.f32 %v1642_v34, %v654_v45  ;;  %v658_v49 = vpop.xlane.xlu0 %657 }
 0x24b   :  { %1271 = vpow2.f32 %v745_v27  ;;  %v717_v51 = vsub.f32 %v1650_v38, %v658_v49 }
 0x24c   :  { %v749_v53 = vmul.f32 1.442695, %v715_v47 }
 0x24d   :  { %v660_v29 = vpop.xlane.xlu1 %659  ;;  %v753_v60 = vmul.f32 1.442695, %v717_v51 }
 0x24e   :  { %1273 = vpow2.f32 %v749_v53  ;;  %v718_v55 = vsub.f32 %v1647_v36, %v660_v29  ;;  %v662_v58 = vpop.xlane.xlu0 %661 }
 0x24f   :  { %v719_v32 = vsub.f32 %v1658_v42, %v662_v58 }
 0x250   :  { %v1766_v31 = vpop.eup %1267  ;;  %v755_v62 = vmul.f32 1.442695, %v718_v55 }
 0x251   :  { %811 = vadd.xlane.f32.xlu1 %v1766_v31  ;;  %v664_v0 = vpop.xlane.xlu1 %663  ;;  %v757_v38 = vmul.f32 1.442695, %v719_v32 }
 0x252   :  { %1275 = vpow2.f32 %v755_v62  ;;  %v720_v34 = vsub.f32 %v1655_v40, %v664_v0  ;;  %v666_v2 = vpop.xlane.xlu0 %665 }
 0x253   :  { %1277 = vpow2.f32 %v753_v60  ;;  %v721_v4 = vsub.f32 %v1666_v46, %v666_v2 }
 0x254   :  { %v1771_v6 = vpop.eup %1269  ;;  %v759_v36 = vmul.f32 1.442695, %v720_v34 }
 0x255   :  { %v1773_v8 = vpop.eup %1271  ;;  %815 = vadd.xlane.f32.xlu1 %v1771_v6  ;;  %v668_v42 = vpop.xlane.xlu1 %667  ;;  %v761_v40 = vmul.f32 1.442695, %v721_v4 }
 0x256   :  { %1279 = vpow2.f32 %v759_v36  ;;  %v722_v10 = vsub.f32 %v1663_v44, %v668_v42  ;;  %809 = vadd.xlane.f32.xlu0 %v1773_v8  ;;  %v670_v12 = vpop.xlane.xlu0 %669 }
 0x257   :  { %1281 = vpow2.f32 %v757_v38  ;;  %v723_v14 = vsub.f32 %v1674_v50, %v670_v12 }
 0x258   :  { %v1779_v16 = vpop.eup %1273  ;;  %v763_v46 = vmul.f32 1.442695, %v722_v10 }
 0x259   :  { %v672_v18 = vpop.xlane.xlu1 %671  ;;  %v765_v24 = vmul.f32 1.442695, %v723_v14 }
 0x25a   :  { %1283 = vpow2.f32 %v763_v46  ;;  %v724_v20 = vsub.f32 %v1671_v48, %v672_v18  ;;  %813 = vadd.xlane.f32.xlu0 %v1779_v16  ;;  %v674_v22 = vpop.xlane.xlu0 %673 }
 0x25b   :  { %1285 = vpow2.f32 %v761_v40  ;;  %v725_v44 = vsub.f32 %v1682_v54, %v674_v22 }
 0x25c   :  { %v1784_v26 = vpop.eup %1275  ;;  %v767_v30 = vmul.f32 1.442695, %v724_v20 }
 0x25d   :  { %v1786_v57 = vpop.eup %1277  ;;  %819 = vadd.xlane.f32.xlu1 %v1784_v26  ;;  %v676_v50 = vpop.xlane.xlu1 %675  ;;  %v769_v35 = vmul.f32 1.442695, %v725_v44 }
 0x25e   :  { %1287 = vpow2.f32 %v767_v30  ;;  %v726_v33 = vsub.f32 %v1679_v52, %v676_v50  ;;  %817 = vadd.xlane.f32.xlu0 %v1786_v57  ;;  %v678_v48 = vpop.xlane.xlu0 %677 }
 0x25f   :  { %1289 = vpow2.f32 %v765_v24  ;;  %v727_v37 = vsub.f32 %v1690_v59, %v678_v48 }
 0x260   :  { %v1792_v39 = vpop.eup %1279  ;;  %v771_v54 = vmul.f32 1.442695, %v726_v33 }
 0x261   :  { %v1794_v41 = vpop.eup %1281  ;;  %823 = vadd.xlane.f32.xlu1 %v1792_v39  ;;  %v680_v43 = vpop.xlane.xlu1 %679  ;;  %v773_v45 = vmul.f32 1.442695, %v727_v37 }
 0x262   :  { %1291 = vpow2.f32 %v771_v54  ;;  %v728_v27 = vsub.f32 %v1687_v56, %v680_v43  ;;  %821 = vadd.xlane.f32.xlu0 %v1794_v41  ;;  %v682_v52 = vpop.xlane.xlu0 %681 }
 0x263   :  { %1293 = vpow2.f32 %v769_v35  ;;  %v729_v47 = vsub.f32 %v1698_v63, %v682_v52 }
 0x264   :  { %v1800_v49 = vpop.eup %1283  ;;  %v775_v59 = vmul.f32 1.442695, %v728_v27 }
 0x265   :  { %v1802_v51 = vpop.eup %1285  ;;  %827 = vadd.xlane.f32.xlu1 %v1800_v49  ;;  %v684_v53 = vpop.xlane.xlu1 %683  ;;  %v777_v55 = vmul.f32 1.442695, %v729_v47 }
 0x266   :  { %1295 = vpow2.f32 %v775_v59  ;;  %v730_v29 = vsub.f32 %v1695_v61, %v684_v53  ;;  %825 = vadd.xlane.f32.xlu0 %v1802_v51  ;;  %v686_v56 = vpop.xlane.xlu0 %685 }
 0x267   :  { %1297 = vpow2.f32 %v773_v45  ;;  %v731_v58 = vsub.f32 %v1706_v3, %v686_v56 }
 0x268   :  { %v1808_v60 = vpop.eup %1287  ;;  %v779_v63 = vmul.f32 1.442695, %v730_v29 }
 0x269   :  { %v1810_v32 = vpop.eup %1289  ;;  %831 = vadd.xlane.f32.xlu1 %v1808_v60  ;;  %v688_v62 = vpop.xlane.xlu1 %687  ;;  %v781_v34 = vmul.f32 1.442695, %v731_v58 }
 0x26a   :  { %1299 = vpow2.f32 %v779_v63  ;;  %v732_v0 = vsub.f32 %v1703_v1, %v688_v62  ;;  %829 = vadd.xlane.f32.xlu0 %v1810_v32  ;;  %v690_v61 = vpop.xlane.xlu0 %689 }
 0x26b   :  { %1301 = vpow2.f32 %v777_v55  ;;  %v733_v2 = vsub.f32 %v1714_v7, %v690_v61 }
 0x26c   :  { %v1816_v38 = vpop.eup %1291  ;;  %v783_v3 = vmul.f32 1.442695, %v732_v0 }
 0x26d   :  { %v1818_v4 = vpop.eup %1293  ;;  %835 = vadd.xlane.f32.xlu1 %v1816_v38  ;;  %v692_v36 = vpop.xlane.xlu1 %691  ;;  %v785_v10 = vmul.f32 1.442695, %v733_v2 }
 0x26e   :  { %1303 = vpow2.f32 %v783_v3  ;;  %v734_v42 = vsub.f32 %v1711_v5, %v692_v36  ;;  %833 = vadd.xlane.f32.xlu0 %v1818_v4  ;;  %v694_v1 = vpop.xlane.xlu0 %693 }
 0x26f   :  { %1305 = vpow2.f32 %v781_v34  ;;  %v735_v12 = vsub.f32 %v1722_v11, %v694_v1 }
 0x270   :  { %v1824_v40 = vpop.eup %1295  ;;  %v787_v7 = vmul.f32 1.442695, %v734_v42 }
 0x271   :  { %v1826_v14 = vpop.eup %1297  ;;  %839 = vadd.xlane.f32.xlu1 %v1824_v40  ;;  %v696_v46 = vpop.xlane.xlu1 %695  ;;  %v789_v20 = vmul.f32 1.442695, %v735_v12 }
 0x272   :  { %1307 = vpow2.f32 %v787_v7  ;;  %v736_v18 = vsub.f32 %v1719_v9, %v696_v46  ;;  %837 = vadd.xlane.f32.xlu0 %v1826_v14  ;;  %v698_v5 = vpop.xlane.xlu0 %697 }
 0x273   :  { %1309 = vpow2.f32 %v785_v10  ;;  %v737_v22 = vsub.f32 %v1730_v15, %v698_v5 }
 0x274   :  { %v1832_v24 = vpop.eup %1299  ;;  %v791_v11 = vmul.f32 1.442695, %v736_v18 }
 0x275   :  { %v1834_v44 = vpop.eup %1301  ;;  %843 = vadd.xlane.f32.xlu1 %v1832_v24  ;;  %v700_v30 = vpop.xlane.xlu1 %699  ;;  %v793_v33 = vmul.f32 1.442695, %v737_v22 }
 0x276   :  { %1311 = vpow2.f32 %v791_v11  ;;  %v738_v50 = vsub.f32 %v1727_v13, %v700_v30  ;;  %841 = vadd.xlane.f32.xlu0 %v1834_v44  ;;  %v702_v9 = vpop.xlane.xlu0 %701 }
 0x277   :  { %1313 = vpow2.f32 %v789_v20  ;;  %v739_v48 = vsub.f32 %v1738_v19, %v702_v9 }
 0x278   :  { %v1840_v35 = vpop.eup %1303  ;;  %v795_v15 = vmul.f32 1.442695, %v738_v50 }
 0x279   :  { %v1842_v37 = vpop.eup %1305  ;;  %847 = vadd.xlane.f32.xlu1 %v1840_v35  ;;  %v704_v54 = vpop.xlane.xlu1 %703  ;;  %v797_v27 = vmul.f32 1.442695, %v739_v48 }
 0x27a   :  { %1315 = vpow2.f32 %v795_v15  ;;  %v740_v43 = vsub.f32 %v1735_v17, %v704_v54  ;;  %845 = vadd.xlane.f32.xlu0 %v1842_v37  ;;  %v706_v13 = vpop.xlane.xlu0 %705 }
 0x27b   :  { %1317 = vpow2.f32 %v793_v33  ;;  %v741_v52 = vsub.f32 %v1746_v23, %v706_v13 }
 0x27c   :  { %v1848_v45 = vpop.eup %1307  ;;  %v799_v19 = vmul.f32 1.442695, %v740_v43 }
 0x27d   :  { %v1850_v47 = vpop.eup %1309  ;;  %851 = vadd.xlane.f32.xlu1 %v1848_v45  ;;  %v708_v59 = vpop.xlane.xlu1 %707  ;;  %v801_v29 = vmul.f32 1.442695, %v741_v52 }
 0x27e   :  { %1319 = vpow2.f32 %v799_v19  ;;  %v742_v53 = vsub.f32 %v1743_v21, %v708_v59  ;;  %849 = vadd.xlane.f32.xlu0 %v1850_v47  ;;  %v710_v17 = vpop.xlane.xlu0 %709 }
 0x27f   :  { %1321 = vpow2.f32 %v797_v27  ;;  %v743_v56 = vsub.f32 %v1754_v28, %v710_v17 }
 0x280   :  { %v1856_v55 = vpop.eup %1311  ;;  %v803_v23 = vmul.f32 1.442695, %v742_v53 }
 0x281   :  { %v1858_v58 = vpop.eup %1313  ;;  %855 = vadd.xlane.f32.xlu1 %v1856_v55  ;;  %v712_v63 = vpop.xlane.xlu1 %711  ;;  %v805_v21 = vmul.f32 1.442695, %v743_v56 }
 0x282   :  { %1323 = vpow2.f32 %v803_v23  ;;  %v744_v62 = vsub.f32 %v1751_v25, %v712_v63  ;;  %853 = vadd.xlane.f32.xlu0 %v1858_v58 }
 0x283   :  { %1325 = vpow2.f32 %v801_v29 }
 0x284   :  { %v1863_v0 = vpop.eup %1315  ;;  %v807_v61 = vmul.f32 1.442695, %v744_v62 }
 0x285   :  { %v1865_v34 = vpop.eup %1317  ;;  %859 = vadd.xlane.f32.xlu1 %v1863_v0 }
 0x286   :  { %1327 = vpow2.f32 %v807_v61  ;;  %857 = vadd.xlane.f32.xlu0 %v1865_v34 }
 0x287   :  { %1329 = vpow2.f32 %v805_v21 }
 0x288   :  { %v1869_v28 = vpop.eup %1319 }
 0x289   :  { %v1871_v2 = vpop.eup %1321  ;;  %863 = vadd.xlane.f32.xlu1 %v1869_v28 }
 0x28a   :  { %861 = vadd.xlane.f32.xlu0 %v1871_v2 }
 0x28c   :  { %v1875_v25 = vpop.eup %1323 }
 0x28d   :  { %v1877_v3 = vpop.eup %1325  ;;  %867 = vadd.xlane.f32.xlu1 %v1875_v25 }
 0x28e   :  { %865 = vadd.xlane.f32.xlu0 %v1877_v3 }
 0x290   :  { %v1881_v36 = vpop.eup %1327 }
 0x291   :  { %v1883_v42 = vpop.eup %1329  ;;  %871 = vadd.xlane.f32.xlu1 %v1881_v36 }
 0x292   :  { %869 = vadd.xlane.f32.xlu0 %v1883_v42 }
 0x2de   :  { %v812_v1 = vpop.xlane.xlu1 %811 }
 0x2df   :  { %1331 = vrcp.f32 %v812_v1 }
 0x2e2   :  { %v816_v10 = vpop.xlane.xlu1 %815 }
 0x2e3   :  { %1333 = vrcp.f32 %v816_v10  ;;  %v810_v12 = vpop.xlane.xlu0 %809 }
 0x2e4   :  { %1335 = vrcp.f32 %v810_v12 }
 0x2e7   :  { %v814_v7 = vpop.xlane.xlu0 %813 }
 0x2e8   :  { %1337 = vrcp.f32 %v814_v7 }
 0x2e9   :  { %v1332_v46 = vpop.eup %1331 }
 0x2ea   :  { %v876_v18 = vmul.f32 %v1332_v46, %v1766_v31  ;;  %v820_v5 = vpop.xlane.xlu1 %819 }
 0x2eb   :  { %1339 = vrcp.f32 %v820_v5  ;;  %v818_v20 = vpop.xlane.xlu0 %817 }
 0x2ec   :  { %939 = vst.msk [vmem:[%s2049_s2 + $0x8] sm:$0xff] %vm937_vm1, %v876_v18  ;;  %1341 = vrcp.f32 %v818_v20 }
 0x2ed   :  { %v1334_v22 = vpop.eup %1333 }
 0x2ee   :  { %v1336_v11 = vpop.eup %1335  ;;  %v880_v30 = vmul.f32 %v1334_v22, %v1771_v6  ;;  %v824_v50 = vpop.xlane.xlu1 %823 }
 0x2ef   :  { %v874_v9 = vmul.f32 %v1336_v11, %v1773_v8  ;;  %1343 = vrcp.f32 %v824_v50  ;;  %v822_v33 = vpop.xlane.xlu0 %821 }
 0x2f0   :  { %941 = vst.msk [vmem:[%s2049_s2 + $0x18] sm:$0xff] %vm937_vm1, %v880_v30  ;;  %1345 = vrcp.f32 %v822_v33 }
 0x2f1   :  { %938 = vst.msk [vmem:[%s2049_s2] sm:$0xff] %vm937_vm1, %v874_v9 }
 0x2f2   :  { %v1338_v31 = vpop.eup %1337  ;;  %v828_v48 = vpop.xlane.xlu1 %827 }
 0x2f3   :  { %v878_v6 = vmul.f32 %v1338_v31, %v1779_v16  ;;  %1347 = vrcp.f32 %v828_v48  ;;  %v826_v15 = vpop.xlane.xlu0 %825 }
 0x2f4   :  { %1349 = vrcp.f32 %v826_v15 }
 0x2f5   :  { %v1340_v8 = vpop.eup %1339  ;;  %940 = vst.msk [vmem:[%s2049_s2 + $0x10] sm:$0xff] %vm937_vm1, %v878_v6 }
 0x2f6   :  { %v1342_v54 = vpop.eup %1341  ;;  %v884_v43 = vmul.f32 %v1340_v8, %v1784_v26  ;;  %v832_v13 = vpop.xlane.xlu1 %831 }
 0x2f7   :  { %v882_v27 = vmul.f32 %v1342_v54, %v1786_v57  ;;  %1351 = vrcp.f32 %v832_v13  ;;  %v830_v52 = vpop.xlane.xlu0 %829 }
 0x2f8   :  { %943 = vst.msk [vmem:[%s2049_s2 + $0x28] sm:$0xff] %vm937_vm1, %v884_v43  ;;  %1353 = vrcp.f32 %v830_v52 }
 0x2f9   :  { %v1344_v16 = vpop.eup %1343  ;;  %942 = vst.msk [vmem:[%s2049_s2 + $0x20] sm:$0xff] %vm937_vm1, %v882_v27 }
 0x2fa   :  { %v1346_v19 = vpop.eup %1345  ;;  %v888_v26 = vmul.f32 %v1344_v16, %v1792_v39  ;;  %v836_v59 = vpop.xlane.xlu1 %835 }
 0x2fb   :  { %v886_v57 = vmul.f32 %v1346_v19, %v1794_v41  ;;  %1355 = vrcp.f32 %v836_v59  ;;  %v834_v53 = vpop.xlane.xlu0 %833 }
 0x2fc   :  { %945 = vst.msk [vmem:[%s2049_s2 + $0x38] sm:$0xff] %vm937_vm1, %v888_v26  ;;  %1357 = vrcp.f32 %v834_v53 }
 0x2fd   :  { %v1348_v17 = vpop.eup %1347  ;;  %944 = vst.msk [vmem:[%s2049_s2 + $0x30] sm:$0xff] %vm937_vm1, %v886_v57 }
 0x2fe   :  { %v1350_v29 = vpop.eup %1349  ;;  %v892_v39 = vmul.f32 %v1348_v17, %v1800_v49  ;;  %v840_v56 = vpop.xlane.xlu1 %839 }
 0x2ff   :  { %v890_v41 = vmul.f32 %v1350_v29, %v1802_v51  ;;  %1359 = vrcp.f32 %v840_v56  ;;  %v838_v23 = vpop.xlane.xlu0 %837 }
 0x300   :  { %947 = vst.msk [vmem:[%s2049_s2 + $0x48] sm:$0xff] %vm937_vm1, %v892_v39  ;;  %1361 = vrcp.f32 %v838_v23 }
 0x301   :  { %v1352_v63 = vpop.eup %1351  ;;  %946 = vst.msk [vmem:[%s2049_s2 + $0x40] sm:$0xff] %vm937_vm1, %v890_v41 }
 0x302   :  { %v1354_v62 = vpop.eup %1353  ;;  %v896_v49 = vmul.f32 %v1352_v63, %v1808_v60  ;;  %v844_v21 = vpop.xlane.xlu1 %843 }
 0x303   :  { %v894_v51 = vmul.f32 %v1354_v62, %v1810_v32  ;;  %1363 = vrcp.f32 %v844_v21  ;;  %v842_v61 = vpop.xlane.xlu0 %841 }
 0x304   :  { %949 = vst.msk [vmem:[%s2049_s2 + $0x58] sm:$0xff] %vm937_vm1, %v896_v49  ;;  %1365 = vrcp.f32 %v842_v61 }
 0x305   :  { %v1356_v1 = vpop.eup %1355  ;;  %948 = vst.msk [vmem:[%s2049_s2 + $0x50] sm:$0xff] %vm937_vm1, %v894_v51 }
 0x306   :  { %v1358_v10 = vpop.eup %1357  ;;  %v900_v60 = vmul.f32 %v1356_v1, %v1816_v38  ;;  %v848_v12 = vpop.xlane.xlu1 %847 }
 0x307   :  { %v898_v32 = vmul.f32 %v1358_v10, %v1818_v4  ;;  %1367 = vrcp.f32 %v848_v12  ;;  %v846_v7 = vpop.xlane.xlu0 %845 }
 0x308   :  { %951 = vst.msk [vmem:[%s2049_s2 + $0x68] sm:$0xff] %vm937_vm1, %v900_v60  ;;  %1369 = vrcp.f32 %v846_v7 }
 0x309   :  { %v1360_v46 = vpop.eup %1359  ;;  %950 = vst.msk [vmem:[%s2049_s2 + $0x60] sm:$0xff] %vm937_vm1, %v898_v32 }
 0x30a   :  { %v1362_v18 = vpop.eup %1361  ;;  %v904_v38 = vmul.f32 %v1360_v46, %v1824_v40  ;;  %v852_v5 = vpop.xlane.xlu1 %851 }
 0x30b   :  { %v902_v4 = vmul.f32 %v1362_v18, %v1826_v14  ;;  %1371 = vrcp.f32 %v852_v5  ;;  %v850_v20 = vpop.xlane.xlu0 %849 }
 0x30c   :  { %953 = vst.msk [vmem:[%s2049_s2 + $0x78] sm:$0xff] %vm937_vm1, %v904_v38  ;;  %1373 = vrcp.f32 %v850_v20 }
 0x30d   :  { %v1364_v22 = vpop.eup %1363  ;;  %952 = vst.msk [vmem:[%s2049_s2 + $0x70] sm:$0xff] %vm937_vm1, %v902_v4 }
 0x30e   :  { %v1366_v11 = vpop.eup %1365  ;;  %v908_v40 = vmul.f32 %v1364_v22, %v1832_v24  ;;  %v856_v30 = vpop.xlane.xlu1 %855 }
 0x30f   :  { %v906_v14 = vmul.f32 %v1366_v11, %v1834_v44  ;;  %1375 = vrcp.f32 %v856_v30  ;;  %v854_v50 = vpop.xlane.xlu0 %853 }
 0x310   :  { %955 = vst.msk [vmem:[%s2049_s2 + $0x88] sm:$0xff] %vm937_vm1, %v908_v40  ;;  %1377 = vrcp.f32 %v854_v50 }
 0x311   :  { %v1368_v9 = vpop.eup %1367  ;;  %954 = vst.msk [vmem:[%s2049_s2 + $0x80] sm:$0xff] %vm937_vm1, %v906_v14 }
 0x312   :  { %v1370_v33 = vpop.eup %1369  ;;  %v912_v24 = vmul.f32 %v1368_v9, %v1840_v35  ;;  %v860_v31 = vpop.xlane.xlu1 %859 }
 0x313   :  { %v910_v44 = vmul.f32 %v1370_v33, %v1842_v37  ;;  %1379 = vrcp.f32 %v860_v31  ;;  %v858_v48 = vpop.xlane.xlu0 %857 }
 0x314   :  { %957 = vst.msk [vmem:[%s2049_s2 + $0x98] sm:$0xff] %vm937_vm1, %v912_v24  ;;  %1381 = vrcp.f32 %v858_v48 }
 0x315   :  { %v1372_v6 = vpop.eup %1371  ;;  %956 = vst.msk [vmem:[%s2049_s2 + $0x90] sm:$0xff] %vm937_vm1, %v910_v44 }
 0x316   :  { %v1374_v15 = vpop.eup %1373  ;;  %v916_v35 = vmul.f32 %v1372_v6, %v1848_v45  ;;  %v864_v8 = vpop.xlane.xlu1 %863 }
 0x317   :  { %v914_v37 = vmul.f32 %v1374_v15, %v1850_v47  ;;  %1383 = vrcp.f32 %v864_v8  ;;  %v862_v54 = vpop.xlane.xlu0 %861 }
 0x318   :  { %959 = vst.msk [vmem:[%s2049_s2 + $0xa8] sm:$0xff] %vm937_vm1, %v916_v35  ;;  %1385 = vrcp.f32 %v862_v54 }
 0x319   :  { %v1376_v43 = vpop.eup %1375  ;;  %958 = vst.msk [vmem:[%s2049_s2 + $0xa0] sm:$0xff] %vm937_vm1, %v914_v37 }
 0x31a   :  { %v1378_v13 = vpop.eup %1377  ;;  %v920_v45 = vmul.f32 %v1376_v43, %v1856_v55  ;;  %v868_v27 = vpop.xlane.xlu1 %867 }
 0x31b   :  { %v918_v47 = vmul.f32 %v1378_v13, %v1858_v58  ;;  %1387 = vrcp.f32 %v868_v27  ;;  %v866_v52 = vpop.xlane.xlu0 %865 }
 0x31c   :  { %961 = vst.msk [vmem:[%s2049_s2 + $0xb8] sm:$0xff] %vm937_vm1, %v920_v45  ;;  %1389 = vrcp.f32 %v866_v52 }
 0x31d   :  { %v1380_v16 = vpop.eup %1379  ;;  %960 = vst.msk [vmem:[%s2049_s2 + $0xb0] sm:$0xff] %vm937_vm1, %v918_v47 }
 0x31e   :  { %v1382_v19 = vpop.eup %1381  ;;  %v924_v55 = vmul.f32 %v1380_v16, %v1863_v0  ;;  %v872_v26 = vpop.xlane.xlu1 %871 }
 0x31f   :  { %v922_v58 = vmul.f32 %v1382_v19, %v1865_v34  ;;  %1391 = vrcp.f32 %v872_v26  ;;  %v870_v59 = vpop.xlane.xlu0 %869 }
 0x320   :  { %963 = vst.msk [vmem:[%s2049_s2 + $0xc8] sm:$0xff] %vm937_vm1, %v924_v55  ;;  %1393 = vrcp.f32 %v870_v59 }
 0x321   :  { %v1384_v57 = vpop.eup %1383  ;;  %962 = vst.msk [vmem:[%s2049_s2 + $0xc0] sm:$0xff] %vm937_vm1, %v922_v58 }
 0x322   :  { %v1386_v53 = vpop.eup %1385  ;;  %v928_v0 = vmul.f32 %v1384_v57, %v1869_v28 }
 0x323   :  { %v926_v17 = vmul.f32 %v1386_v53, %v1871_v2 }
 0x324   :  { %965 = vst.msk [vmem:[%s2049_s2 + $0xd8] sm:$0xff] %vm937_vm1, %v928_v0 }
 0x325   :  { %v1388_v34 = vpop.eup %1387  ;;  %964 = vst.msk [vmem:[%s2049_s2 + $0xd0] sm:$0xff] %vm937_vm1, %v926_v17 }
 0x326   :  { %v1390_v29 = vpop.eup %1389  ;;  %v932_v39 = vmul.f32 %v1388_v34, %v1875_v25 }
 0x327   :  { %v930_v56 = vmul.f32 %v1390_v29, %v1877_v3 }
 0x328   :  { %967 = vst.msk [vmem:[%s2049_s2 + $0xe8] sm:$0xff] %vm937_vm1, %v932_v39 }
 0x329   :  { %v1392_v28 = vpop.eup %1391  ;;  %966 = vst.msk [vmem:[%s2049_s2 + $0xe0] sm:$0xff] %vm937_vm1, %v930_v56 }
 0x32a   :  { %v1394_v2 = vpop.eup %1393  ;;  %v936_v41 = vmul.f32 %v1392_v28, %v1881_v36 }
 0x32b   :  { %v934_v23 = vmul.f32 %v1394_v2, %v1883_v42 }
 0x32c   :  { %969 = vst.msk [vmem:[%s2049_s2 + $0xf8] sm:$0xff] %vm937_vm1, %v936_v41 }
 0x32d   :  { %968 = vst.msk [vmem:[%s2049_s2 + $0xf0] sm:$0xff] %vm937_vm1, %v934_v23 }

</bundles_post_ra>
